<compile_context>
chip_gen: v7x
topology: tpu7x:2x2x1
jax: 0.10.0
libtpu: 0.0.40
codegen_flags: <defaults>
</compile_context>

<pallas_src>
import functools

import jax
import jax.numpy as jnp
from jax.experimental import pallas as pl
from jax.experimental.pallas import tpu as pltpu


def build_positional_encoding(max_len, d_model, dtype=jnp.float32):
    """Fixed sin/cos table, exactly as in the PyTorch __init__ (even d_model)."""
    position = jnp.arange(max_len, dtype=jnp.float32)[:, None]            # (L, 1)
    div_term = jnp.exp(jnp.arange(0, d_model, 2, dtype=jnp.float32)
                       * (-jnp.log(jnp.float32(10000.0)) / d_model))      # (D/2,)
    pe = jnp.zeros((max_len, d_model), jnp.float32)
    pe = pe.at[:, 0::2].set(jnp.sin(position * div_term))
    pe = pe.at[:, 1::2].set(jnp.cos(position * div_term))
    return pe.astype(dtype)                                               # (L, D)


def pe_add_kernel(x_ref, pe_ref, o_ref, *, batch):
    # x_ref/o_ref: (tS, B*D) lane-dense slab; pe_ref: (tS, D) pe rows.
    # Replicate the pe tile across the B lane-groups, then a single dense add.
    pe_tile = pe_ref[...].astype(o_ref.dtype)
    if batch > 1:
        pe_wide = jnp.concatenate([pe_tile] * batch, axis=-1)             # (tS, B*D)
    else:
        pe_wide = pe_tile
    o_ref[...] = x_ref[...].astype(o_ref.dtype) + pe_wide


def _round_up(n, m):
    return ((n + m - 1) // m) * m


def _num_tensorcores():
    # Only v7x has 2 TensorCores sharable via dimension_semantics=("parallel",).
    try:
        kind = (getattr(jax.devices()[0], "device_kind", "") or "").lower()
        if "v7" in kind:
            return 2
    except Exception:
        pass
    return 1


def _seq_tile(S, row_bytes, target_bytes=4 << 20):
    """Fixed seq tile: multiple of 8, ~4 MiB per x block, cdiv grid handles
    ragged S.  On v7x only, keep >= 2 grid steps so both TensorCores get work."""
    tS = max(8, ((target_bytes // max(1, row_bytes)) // 8) * 8)
    tS = min(tS, _round_up(S, 8))
    if _num_tensorcores() >= 2 and S > 8:
        tS = min(tS, _round_up(pl.cdiv(S, 2), 8))
    return tS


def fixed_positional_encoding_forward(x, pe):
    """x: (S, B, D); pe: (max_len, D) fixed buffer. Returns x + pe[:S, None, :]."""
    S, B, D = x.shape
    max_len, d_pe = pe.shape
    assert max_len >= S and d_pe == D
    out_dtype = jnp.promote_types(x.dtype, pe.dtype)   # PyTorch-style promotion

    # Free, contiguous reshape to a lane-dense 2D slab (B*D on the lane axis).
    x2 = x.reshape(S, B * D)

    tS = _seq_tile(S, B * D * jnp.dtype(out_dtype).itemsize)
    grid = (pl.cdiv(S, tS),)

    out2 = pl.pallas_call(
        functools.partial(pe_add_kernel, batch=B),
        out_shape=jax.ShapeDtypeStruct((S, B * D), out_dtype),
        grid_spec=pltpu.PrefetchScalarGridSpec(
            num_scalar_prefetch=0,
            grid=grid,
            in_specs=[
                pl.BlockSpec((tS, B * D), lambda i: (i, 0)),   # x slab, lane-dense
                pl.BlockSpec((tS, D), lambda i: (i, 0)),       # pe rows via index_map
            ],
            out_specs=pl.BlockSpec((tS, B * D), lambda i: (i, 0)),
        ),
        compiler_params=pltpu.CompilerParams(
            dimension_semantics=("parallel",),
            vmem_limit_bytes=48 << 20,   # > v5e's 16 MiB scoped default, < v7x's 64 MiB VMEM
        ),
    )(x2, pe)

    return out2.reshape(S, B, D)


if __name__ == "__main__":
    # Small shapes consistent with the module: (seq_len, batch, d_model).
    # d_model a multiple of 128 keeps every load/store lane-dense.
    S, B, D, MAX_LEN = 16, 4, 128, 64

    key = jax.random.PRNGKey(0)
    x = jax.random.normal(key, (S, B, D), dtype=jnp.float32)
    pe = build_positional_encoding(MAX_LEN, D)

    out = fixed_positional_encoding_forward(x, pe)
    out = jax.block_until_ready(out)
    assert out.shape == (S, B, D)

    ref = x + pe[:S][:, None, :]
    err = float(jnp.max(jnp.abs(out - ref)))
    assert err < 1e-6, f"mismatch vs reference: max-abs-err={err}"

    print("KERNEL_OK")
</pallas_src>

<mosaic_0001>
module attributes {stable_mosaic.version = 11 : i64} {
  func.func @pe_add_kernel(%arg0: i32, %arg1: memref<16x512xf32, #tpu.memory_space<vmem>>, %arg2: memref<16x128xf32, #tpu.memory_space<vmem>>, %arg3: memref<16x512xf32, #tpu.memory_space<vmem>>) attributes {dimension_semantics = [#tpu.dimension_semantics<parallel>], iteration_bounds = array<i64: 1>, scalar_prefetch = 0 : i64, scratch_operands = 0 : i64, tpu.core_type = #tpu.core_type<tc>, window_params = [{transform_indices = @transform_0, window_bounds = array<i64: 16, 512>}, {transform_indices = @transform_1, window_bounds = array<i64: 16, 128>}, {transform_indices = @transform_2, window_bounds = array<i64: 16, 512>}]} {
    %c0 = arith.constant 0 : index
    %c0_0 = arith.constant 0 : index
    %0 = vector.load %arg2[%c0, %c0_0] : memref<16x128xf32, #tpu.memory_space<vmem>>, vector<16x128xf32>
    %1 = tpu.concatenate %0, %0, %0, %0 in 1 : vector<16x128xf32>, vector<16x128xf32>, vector<16x128xf32>, vector<16x128xf32> -> vector<16x512xf32>
    %c0_1 = arith.constant 0 : index
    %c0_2 = arith.constant 0 : index
    %2 = vector.load %arg1[%c0_1, %c0_2] : memref<16x512xf32, #tpu.memory_space<vmem>>, vector<16x512xf32>
    %3 = arith.addf %2, %1 : vector<16x512xf32>
    %c0_3 = arith.constant 0 : index
    %c0_4 = arith.constant 0 : index
    %4 = vector.load %arg3[%c0_3, %c0_4] : memref<16x512xf32, #tpu.memory_space<vmem>>, vector<16x512xf32>
    tpu.vector_store %arg3[%c0_3, %c0_4], %3 {strides = array<i32>} : memref<16x512xf32, #tpu.memory_space<vmem>>, vector<16x512xf32>,
    return
  }
  func.func @transform_0(%arg0: i32) -> (i32, i32) {
    %c0_i32 = arith.constant 0 : i32
    %c0_i32_0 = arith.constant 0 : i32
    return %arg0, %c0_i32 : i32, i32
  }
  func.func @transform_1(%arg0: i32) -> (i32, i32) {
    %c0_i32 = arith.constant 0 : i32
    %c0_i32_0 = arith.constant 0 : i32
    return %arg0, %c0_i32 : i32, i32
  }
  func.func @transform_2(%arg0: i32) -> (i32, i32) {
    %c0_i32 = arith.constant 0 : i32
    %c0_i32_0 = arith.constant 0 : i32
    return %arg0, %c0_i32 : i32, i32
  }
}

</mosaic_0001>

<bundles_post_ra>
// kernel: tpu_custom_call.1
= control target key start
LH: loop header
LB: loop body
LE: loop exit
PB: predicated region body
PF: predicated region fallthrough
CT: control target
= control target key end

     0   :  { %7 = vsyncpa [#allocation3], 0  ;;  %s230_s0 = inlined_call_operand.hbm [shape: f32[16,512], index: 0, kind: input, shape index: {}]   ;;  %s231_s1 = inlined_call_operand.hbm [shape: f32[64,128], index: 1, kind: input, shape index: {}]   ;;  %s232_s2 = inlined_call_operand.hbm [shape: f32[16,512], index: 2, kind: output, shape index: {}]  }
   0x1   :  { %8 = vsyncpa [#allocation6], 0 }
   0x2   :  { %9 = vsyncpa [#allocation4], 0  ;;  %s163_s9 = smov [#allocation2]   ;;  %s91_s13 = scalar_lea.hbm %s230_s0, 1024 }
   0x3   :  { %s15_s10 = sshll.u32 %s163_s9, 4  ;;  %p92_p0 = scmp.ne.s32.totalorder %s230_s0, %s91_s13  ;;  %s16_s10 = int_to_ptr.vmem [resolvable:$true] %s15_s10 }
   0x4   :  { %p95_p1 = scmp.lt.u32.totalorder %s91_s13, %s230_s0 }
   0x6   :  { %p97_p2 = pnand %p95_p1, %p92_p0 }
   0x8   :  { %100 = shalt.err (!%p97_p2)
}
   0x9   :  { %s101_s18 = scalar_lea.vmem %s16_s10, 1024  ;;  %p106_p4 = scmp.lt.s32.totalorder %s16_s10, %s16_s10 }
   0xa   :  { %p102_p3 = scmp.ne.s32.totalorder %s16_s10, %s101_s18  ;;  %p107_p5 = scmp.lt.s32.totalorder %s101_s18, %s101_s18 }
   0xc   :  { %p108_p6 = por %p107_p5, %p106_p4 }
   0xe   :  { %p109_p7 = pnand %p108_p6, %p102_p3 }
  0x10   :  { %112 = shalt.err (!%p109_p7)
}
  0x11   :  { %s164_s19 = smov 512   ;;  %s165_s20 = smov 32  }
  0x12   :  { %21 = dma.hbm_to_vmem [thread:$0]  %s230_s0, 1024, %s16_s10, [#allocation3], %s164_s19, %s164_s19, %s165_s20  }
  0x13   :  { %s166_s23 = smov [#allocation5]   ;;  %s113_s27 = scalar_lea.hbm %s231_s1, 256 }
  0x14   :  { %s27_s24 = sshll.u32 %s166_s23, 4  ;;  %p114_p8 = scmp.ne.s32.totalorder %s231_s1, %s113_s27  ;;  %s28_s24 = int_to_ptr.vmem [resolvable:$true] %s27_s24 }
  0x15   :  { %s115_s4 = scalar_lea.hbm %s231_s1, 1024  ;;  %p117_p10 = scmp.lt.u32.totalorder %s113_s27, %s231_s1 }
  0x16   :  { %p116_p9 = scmp.lt.u32.totalorder %s115_s4, %s113_s27 }
  0x18   :  { %p118_p11 = por %p117_p10, %p116_p9 }
  0x1a   :  { %p119_p12 = pnand %p118_p11, %p114_p8 }
  0x1c   :  { %122 = shalt.err (!%p119_p12)
}
  0x1d   :  { %s123_s0 = scalar_lea.vmem %s28_s24, 256  ;;  %p128_p0 = scmp.lt.s32.totalorder %s28_s24, %s28_s24 }
  0x1e   :  { %p124_p13 = scmp.ne.s32.totalorder %s28_s24, %s123_s0  ;;  %p129_p1 = scmp.lt.s32.totalorder %s123_s0, %s123_s0 }
  0x20   :  { %p130_p2 = por %p129_p1, %p128_p0 }
  0x22   :  { %p131_p3 = pnand %p130_p2, %p124_p13 }
  0x24   :  { %134 = shalt.err (!%p131_p3)
}
  0x25   :  { %s167_s7 = smov 128   ;;  %s168_s8 = smov 8  }
  0x26   :  { %33 = dma.hbm_to_vmem [thread:$0]  %s231_s1, 256, %s28_s24, [#allocation6], %s167_s7, %s167_s7, %s168_s8  }
  0x27   :  { %157 = dma.done.wait [#allocation3], 1024  }
  0x28   :  { %158 = vsyncadd [#allocation3], 4294966272 }
  0x29   :  { %159 = dma.done.wait [#allocation6], 256  }
  0x2a   :  { %160 = vsyncadd [#allocation6], 4294967040  ;;  %v40_v0 = vld [vmem:[#allocation5] sm:$0xff]  ;;  %v43_v2 = vld [vmem:[#allocation2 + $0x8] sm:$0xff]  ;;  %s169_s11 = smov [#allocation7]  }
  0x2b   :  { %v42_v1 = vld [vmem:[#allocation2] sm:$0xff]  ;;  %v51_v4 = vadd.f32 %v43_v2, %v40_v0  ;;  %v44_v5 = vld [vmem:[#allocation2 + $0x10] sm:$0xff]  ;;  %v45_v6 = vld [vmem:[#allocation2 + $0x18] sm:$0xff]  ;;  %s71_s12 = sshll.u32 %s169_s11, 4  ;;  %s72_s12 = int_to_ptr.vmem [resolvable:$true] %s71_s12 }
  0x2c   :  { %v50_v3 = vadd.f32 %v42_v1, %v40_v0  ;;  %v41_v7 = vld [vmem:[#allocation5 + $0x8] sm:$0xff]  ;;  %v52_v8 = vadd.f32 %v44_v5, %v40_v0  ;;  %v53_v9 = vadd.f32 %v45_v6, %v40_v0  ;;  %v46_v10 = vld [vmem:[#allocation2 + $0x20] sm:$0xff]  ;;  %v48_v12 = vld [vmem:[#allocation2 + $0x30] sm:$0xff]  ;;  %s135_s1 = scalar_lea.vmem %s72_s12, 1024  ;;  %p140_p5 = scmp.lt.s32.totalorder %s72_s12, %s72_s12 }
  0x2d   :  { %v47_v11 = vld [vmem:[#allocation2 + $0x28] sm:$0xff]  ;;  %59 = vst [vmem:[#allocation7 + $0x8] sm:$0xff] %v51_v4  ;;  %v54_v13 = vadd.f32 %v46_v10, %v41_v7  ;;  %v56_v15 = vadd.f32 %v48_v12, %v41_v7  ;;  %v49_v16 = vld [vmem:[#allocation2 + $0x38] sm:$0xff]  ;;  %p136_p4 = scmp.ne.s32.totalorder %s72_s12, %s135_s1  ;;  %p141_p6 = scmp.lt.s32.totalorder %s135_s1, %s135_s1 }
  0x2e   :  { %58 = vst [vmem:[#allocation7] sm:$0xff] %v50_v3  ;;  %v55_v14 = vadd.f32 %v47_v11, %v41_v7  ;;  %60 = vst [vmem:[#allocation7 + $0x10] sm:$0xff] %v52_v8  ;;  %v57_v17 = vadd.f32 %v49_v16, %v41_v7 }
  0x2f   :  { %61 = vst [vmem:[#allocation7 + $0x18] sm:$0xff] %v53_v9  ;;  %62 = vst [vmem:[#allocation7 + $0x20] sm:$0xff] %v54_v13  ;;  %p142_p7 = por %p141_p6, %p140_p5 }
  0x30   :  { %63 = vst [vmem:[#allocation7 + $0x28] sm:$0xff] %v55_v14  ;;  %64 = vst [vmem:[#allocation7 + $0x30] sm:$0xff] %v56_v15 }
  0x31   :  { %65 = vst [vmem:[#allocation7 + $0x38] sm:$0xff] %v57_v17  ;;  %p143_p8 = pnand %p142_p7, %p136_p4 }
  0x33   :  { %146 = shalt.err (!%p143_p8)
}
  0x34   :  { %s147_s15 = scalar_lea.hbm %s232_s2, 1024 }
  0x35   :  { %p148_p9 = scmp.ne.s32.totalorder %s232_s2, %s147_s15  ;;  %p151_p10 = scmp.lt.u32.totalorder %s147_s15, %s232_s2 }
  0x37   :  { %p153_p11 = pnand %p151_p10, %p148_p9 }
  0x39   :  { %156 = shalt.err (!%p153_p11)
}
  0x3a   :  { %77 = dma.vmem_to_hbm [thread:$0]  %s72_s12, 1024, %s232_s2, [#allocation4], %s164_s19, %s164_s19, %s165_s20  }
  0x3b   :  { %161 = dma.done.wait [#allocation4], 1024  }
  0x3c   :  { %162 = vsyncadd [#allocation4], 4294966272 }
  0x3d   :  { %81 = vsyncpa [#allocation3], 1 }
  0x3e   :  { %82 = vsyncpa [#allocation6], 1 }
  0x3f   :  { %83 = vsyncpa [#allocation4], 1 }

</bundles_post_ra>
